<compile_context>
chip_gen: v5e
topology: v5e:2x2
jax: 0.10.0
libtpu: 0.0.40
codegen_flags: <defaults>
</compile_context>

<pallas_src>
import math
from functools import partial

import numpy as np
import jax
import jax.numpy as jnp
from jax.experimental import pallas as pl
from jax.experimental.pallas import tpu as pltpu

# ---------------- config (mirrors the PyTorch module's __init__) ----------------
B = 2
T = 8
C = 32             # n_embd
H = 4 * C          # hidden dim = 4 * n_embd = 128
DROPOUT = 0.0      # eval mode -> Dropout is a no-op

_SQRT_2_OVER_PI = math.sqrt(2.0 / math.pi)


def _gelu_tanh(x):
    # TODO(synk): PyTorch nn.GELU() default is the exact erf form; the tanh
    # approximation (== nn.GELU(approximate='tanh'), max abs deviation ~3e-4)
    # is used because tanh has a guaranteed Mosaic lowering onto the EUP.
    return 0.5 * x * (1.0 + jnp.tanh(_SQRT_2_OVER_PI * (x + 0.044715 * x * x * x)))


# ---------------- Pallas kernel ----------------
def mlp_kernel(x_ref, wfc_ref, bfc_ref, wproj_ref, bproj_ref, o_ref):
    wfc = wfc_ref[...]                                   # (C, H), VMEM resident
    wproj = wproj_ref[...]                               # (H, C), VMEM resident

    # Cast MXU inputs to the weight dtype (f32 -> no-op; bf16 -> native MXU).
    x = x_ref[...].astype(wfc.dtype)                     # (bm, C)
    h = jnp.dot(x, wfc, preferred_element_type=jnp.float32) + bfc_ref[...]   # (bm, H) f32
    h = _gelu_tanh(h)                                    # f32 on VPU/EUP (v5e-safe)
    y = (jnp.dot(h.astype(wproj.dtype), wproj,
                 preferred_element_type=jnp.float32) + bproj_ref[...])       # (bm, C) f32

    # Dropout(p=0.0) / eval mode is the identity.
    # TODO(synk): training-mode dropout would need pltpu.prng_seed / prng_random_bits.
    o_ref[...] = y.astype(o_ref.dtype)


# ---------------- one-time parameter preparation (NOT per-call) ----------------
def prepare_params(w_fc, b_fc, w_proj, b_proj, *, matmul_dtype=jnp.float32):
    """PyTorch Linear weights are (out, in); the kernel wants (in, out).
    Do this once at setup so no per-forward transpose/layout HBM traffic remains."""
    wfc_t = jnp.asarray(w_fc).T.astype(matmul_dtype)        # (C, 4C)
    wproj_t = jnp.asarray(w_proj).T.astype(matmul_dtype)    # (4C, C)
    bfc_2d = jnp.asarray(b_fc, jnp.float32).reshape(1, -1)  # (1, 4C)
    bproj_2d = jnp.asarray(b_proj, jnp.float32).reshape(1, -1)  # (1, C)
    return wfc_t, bfc_2d, wproj_t, bproj_2d


# ---------------- jitted forward ----------------
@partial(jax.jit, static_argnames=("block_rows",))
def mlp_forward(x, wfc_t, bfc_2d, wproj_t, bproj_2d, *, block_rows=1024):
    """x: (B, T, C) f32.  Weights pre-transposed: wfc_t (C, H), wproj_t (H, C)."""
    Bsz, Tlen, Cdim = x.shape
    Hdim = wfc_t.shape[1]
    rows = Bsz * Tlen

    x2 = x.reshape(rows, Cdim)                           # fold batch*seq into rows

    # Row-tile selection (all static).
    bm = rows if rows <= block_rows else block_rows
    # v7x has 2 TensorCores: when there is enough work, keep >=4 grid steps so
    # each core gets >=2 blocks to overlap DMA/compute.  No-op at toy sizes.
    if rows >= 4 * 512 and rows // bm < 4:
        bm = max(512, 8 * pl.cdiv(rows, 4 * 8))
    grid = (pl.cdiv(rows, bm),)

    itemsize_x = jnp.dtype(x.dtype).itemsize
    itemsize_w = jnp.dtype(wfc_t.dtype).itemsize
    weight_bytes = (Cdim * Hdim + Hdim * Cdim) * itemsize_w + (Hdim + Cdim) * 4
    # double-buffered x/out tiles + (default-)double-buffered constant weights
    # + f32 hidden intermediate, with 2x margin for compiler scratch.
    tile_bytes = 4 * bm * Cdim * itemsize_x + bm * Hdim * 4
    vmem_limit = int(min(max(2 * (2 * weight_bytes + tile_bytes), 16 << 20), 64 << 20))

    cost = pl.CostEstimate(
        flops=2 * rows * Cdim * Hdim + 2 * rows * Hdim * Cdim,
        transcendentals=rows * Hdim,
        bytes_accessed=2 * rows * Cdim * itemsize_x + weight_bytes,
    )

    out = pl.pallas_call(
        mlp_kernel,
        out_shape=jax.ShapeDtypeStruct((rows, Cdim), x.dtype),
        grid=grid,
        in_specs=[
            pl.BlockSpec((bm, Cdim), lambda i: (i, 0)),      # x row slab (streamed)
            pl.BlockSpec((Cdim, Hdim), lambda i: (0, 0)),    # W_fc^T   (VMEM resident)
            pl.BlockSpec((1, Hdim), lambda i: (0, 0)),       # b_fc
            pl.BlockSpec((Hdim, Cdim), lambda i: (0, 0)),    # W_proj^T (VMEM resident)
            pl.BlockSpec((1, Cdim), lambda i: (0, 0)),       # b_proj
        ],
        out_specs=pl.BlockSpec((bm, Cdim), lambda i: (i, 0)),
        compiler_params=pltpu.CompilerParams(
            dimension_semantics=("parallel",),
            vmem_limit_bytes=vmem_limit,
        ),
        cost_estimate=cost,
    )(x2, wfc_t, bfc_2d, wproj_t, bproj_2d)

    return out.reshape(Bsz, Tlen, Cdim)


# ---------------- pure-JAX reference (mirrors the PyTorch forward) ----------------
def reference(x, w_fc, b_fc, w_proj, b_proj):
    h = x @ w_fc.T + b_fc
    h = _gelu_tanh(h)
    y = h @ w_proj.T + b_proj
    return y                                              # dropout(p=0) in eval is identity


if __name__ == "__main__":
    key = jax.random.PRNGKey(0)
    kx, kw1, kb1, kw2, kb2 = jax.random.split(key, 5)

    x = jax.random.normal(kx, (B, T, C), jnp.float32)
    # deterministic parameter init (PyTorch Linear shapes: weight (out, in))
    w_fc = jax.random.normal(kw1, (H, C), jnp.float32) * 0.02
    b_fc = jax.random.normal(kb1, (H,), jnp.float32) * 0.02
    w_proj = jax.random.normal(kw2, (C, H), jnp.float32) * 0.02
    b_proj = jax.random.normal(kb2, (C,), jnp.float32) * 0.02

    # One-time layout prep (f32 matmul path so the tight tolerance below holds;
    # pass matmul_dtype=jnp.bfloat16 here at real sizes for the bf16 MXU path).
    params = prepare_params(w_fc, b_fc, w_proj, b_proj, matmul_dtype=jnp.float32)

    y = mlp_forward(x, *params)
    y = jax.block_until_ready(y)

    y_ref = reference(x, w_fc, b_fc, w_proj, b_proj)
    np.testing.assert_allclose(np.asarray(y), np.asarray(y_ref), rtol=1e-4, atol=1e-5)

    print("KERNEL_OK")
</pallas_src>

<mosaic_0001>
module attributes {stable_mosaic.version = 11 : i64} {
  func.func @mlp_kernel(%arg0: i32, %arg1: memref<16x32xf32, #tpu.memory_space<vmem>>, %arg2: memref<32x128xf32, #tpu.memory_space<vmem>>, %arg3: memref<1x128xf32, #tpu.memory_space<vmem>>, %arg4: memref<128x32xf32, #tpu.memory_space<vmem>>, %arg5: memref<1x32xf32, #tpu.memory_space<vmem>>, %arg6: memref<16x32xf32, #tpu.memory_space<vmem>>) attributes {dimension_semantics = [#tpu.dimension_semantics<parallel>], iteration_bounds = array<i64: 1>, scalar_prefetch = 0 : i64, scratch_operands = 0 : i64, tpu.core_type = #tpu.core_type<tc>, window_params = [{transform_indices = @transform_0, window_bounds = array<i64: 16, 32>}, {pipeline_mode = #tpu.pipeline_mode<synchronous>, transform_indices = @transform_1, window_bounds = array<i64: 32, 128>}, {pipeline_mode = #tpu.pipeline_mode<synchronous>, transform_indices = @transform_2, window_bounds = array<i64: 1, 128>}, {pipeline_mode = #tpu.pipeline_mode<synchronous>, transform_indices = @transform_3, window_bounds = array<i64: 128, 32>}, {pipeline_mode = #tpu.pipeline_mode<synchronous>, transform_indices = @transform_4, window_bounds = array<i64: 1, 32>}, {transform_indices = @transform_5, window_bounds = array<i64: 16, 32>}]} {
    %c0 = arith.constant 0 : index
    %c0_0 = arith.constant 0 : index
    %0 = vector.load %arg2[%c0, %c0_0] : memref<32x128xf32, #tpu.memory_space<vmem>>, vector<32x128xf32>
    %c0_1 = arith.constant 0 : index
    %c0_2 = arith.constant 0 : index
    %1 = vector.load %arg4[%c0_1, %c0_2] : memref<128x32xf32, #tpu.memory_space<vmem>>, vector<128x32xf32>
    %c0_3 = arith.constant 0 : index
    %c0_4 = arith.constant 0 : index
    %2 = vector.load %arg1[%c0_3, %c0_4] : memref<16x32xf32, #tpu.memory_space<vmem>>, vector<16x32xf32>
    %cst = arith.constant dense<0.000000e+00> : vector<16x128xf32>
    %3 = tpu.matmul %2, %0, %cst {dimension_numbers = #tpu.dot_dimension_numbers<[1], [0], [0], [1], [0, 0, 1, 1], [], []>} : vector<16x32xf32>, vector<32x128xf32>, vector<16x128xf32> -> vector<16x128xf32>
    %c0_5 = arith.constant 0 : index
    %c0_6 = arith.constant 0 : index
    %4 = vector.load %arg3[%c0_5, %c0_6] : memref<1x128xf32, #tpu.memory_space<vmem>>, vector<1x128xf32>
    %5 = vector.broadcast %4 : vector<1x128xf32> to vector<16x128xf32>
    %6 = arith.addf %3, %5 : vector<16x128xf32>
    %cst_7 = arith.constant 5.000000e-01 : f32
    %7 = vector.broadcast %cst_7 : f32 to vector<16x128xf32>
    %8 = arith.mulf %7, %6 : vector<16x128xf32>
    %cst_8 = arith.constant 4.471500e-02 : f32
    %9 = vector.broadcast %cst_8 : f32 to vector<16x128xf32>
    %10 = arith.mulf %9, %6 : vector<16x128xf32>
    %11 = arith.mulf %10, %6 : vector<16x128xf32>
    %12 = arith.mulf %11, %6 : vector<16x128xf32>
    %13 = arith.addf %6, %12 : vector<16x128xf32>
    %cst_9 = arith.constant 0.797884583 : f32
    %14 = vector.broadcast %cst_9 : f32 to vector<16x128xf32>
    %15 = arith.mulf %14, %13 : vector<16x128xf32>
    %16 = math.tanh %15 : vector<16x128xf32>
    %cst_10 = arith.constant 1.000000e+00 : f32
    %17 = vector.broadcast %cst_10 : f32 to vector<16x128xf32>
    %18 = arith.addf %17, %16 : vector<16x128xf32>
    %19 = arith.mulf %8, %18 : vector<16x128xf32>
    %cst_11 = arith.constant dense<0.000000e+00> : vector<16x32xf32>
    %20 = tpu.matmul %19, %1, %cst_11 {dimension_numbers = #tpu.dot_dimension_numbers<[1], [0], [0], [1], [0, 0, 1, 1], [], []>} : vector<16x128xf32>, vector<128x32xf32>, vector<16x32xf32> -> vector<16x32xf32>
    %c0_12 = arith.constant 0 : index
    %c0_13 = arith.constant 0 : index
    %21 = vector.load %arg5[%c0_12, %c0_13] : memref<1x32xf32, #tpu.memory_space<vmem>>, vector<1x32xf32>
    %22 = vector.broadcast %21 : vector<1x32xf32> to vector<16x32xf32>
    %23 = arith.addf %20, %22 : vector<16x32xf32>
    %c0_14 = arith.constant 0 : index
    %c0_15 = arith.constant 0 : index
    %24 = vector.load %arg6[%c0_14, %c0_15] : memref<16x32xf32, #tpu.memory_space<vmem>>, vector<16x32xf32>
    tpu.vector_store %arg6[%c0_14, %c0_15], %23 {strides = array<i32>} : memref<16x32xf32, #tpu.memory_space<vmem>>, vector<16x32xf32>,
    return
  }
  func.func @transform_0(%arg0: i32) -> (i32, i32) {
    %c0_i32 = arith.constant 0 : i32
    %c0_i32_0 = arith.constant 0 : i32
    return %arg0, %c0_i32 : i32, i32
  }
  func.func @transform_1(%arg0: i32) -> (i32, i32) {
    %c0_i32 = arith.constant 0 : i32
    %c0_i32_0 = arith.constant 0 : i32
    %c0_i32_1 = arith.constant 0 : i32
    return %c0_i32, %c0_i32_0 : i32, i32
  }
  func.func @transform_2(%arg0: i32) -> (i32, i32) {
    %c0_i32 = arith.constant 0 : i32
    %c0_i32_0 = arith.constant 0 : i32
    %c0_i32_1 = arith.constant 0 : i32
    return %c0_i32, %c0_i32_0 : i32, i32
  }
  func.func @transform_3(%arg0: i32) -> (i32, i32) {
    %c0_i32 = arith.constant 0 : i32
    %c0_i32_0 = arith.constant 0 : i32
    %c0_i32_1 = arith.constant 0 : i32
    return %c0_i32, %c0_i32_0 : i32, i32
  }
  func.func @transform_4(%arg0: i32) -> (i32, i32) {
    %c0_i32 = arith.constant 0 : i32
    %c0_i32_0 = arith.constant 0 : i32
    %c0_i32_1 = arith.constant 0 : i32
    return %c0_i32, %c0_i32_0 : i32, i32
  }
  func.func @transform_5(%arg0: i32) -> (i32, i32) {
    %c0_i32 = arith.constant 0 : i32
    %c0_i32_0 = arith.constant 0 : i32
    return %arg0, %c0_i32 : i32, i32
  }
}

</mosaic_0001>

<bundles_post_ra>
// kernel: mlp_forward.1
= control target key start
LH: loop header
LB: loop body
LE: loop exit
PB: predicated region body
PF: predicated region fallthrough
CT: control target
= control target key end

     0   :  { %s307_s0 = inlined_call_operand.vmem [shape: f32[16,32], index: 0, kind: input, shape index: {}]   ;;  %s308_s1 = inlined_call_operand.vmem [shape: f32[32,128], index: 1, kind: input, shape index: {}]   ;;  %s309_s2 = inlined_call_operand.vmem [shape: f32[1,128], index: 2, kind: input, shape index: {}]   ;;  %s310_s3 = inlined_call_operand.vmem [shape: f32[128,32], index: 3, kind: input, shape index: {}]   ;;  %s311_s4 = inlined_call_operand.vmem [shape: f32[1,32], index: 4, kind: input, shape index: {}]   ;;  %s312_s5 = inlined_call_operand.hbm [shape: f32[16,32], index: 5, kind: output, shape index: {}]  }
   0x1   :  { %v24_v0 = vld [vmem:[%s308_s1 + $0x18] sm:$0xff]  ;;  %v23_v1 = vld [vmem:[%s308_s1 + $0x10] sm:$0xff]  ;;  %v22_v2 = vld [vmem:[%s308_s1 + $0x8] sm:$0xff] }
   0x2   :  { %66 = vmatpush.msra.mxu0 %v24_v0  ;;  %v40_v3 = vld [vmem:[%s310_s3 + $0x78] sm:$0xff]  ;;  %v39_v4 = vld [vmem:[%s310_s3 + $0x70] sm:$0xff]  ;;  %v21_v5 = vld [vmem:[%s308_s1] sm:$0xff] }
   0x3   :  { %99 = vmatpush.msra.mxu1 %v40_v3  ;;  %v38_v6 = vld [vmem:[%s310_s3 + $0x68] sm:$0xff]  ;;  %144 = vmatpush.msra.mxu2 %v40_v3 }
   0x4   :  { %67 = vmatpush.msra.mxu0 %v23_v1 }
   0x5   :  { %10 = vsyncpa [#allocation3], 0  ;;  %v41_v7 = vld [vmem:[%s307_s0] sm:$0xff]  ;;  %vm47_vm0 = vcmask 261120   ;;  %100 = vmatpush.msra.mxu1 %v39_v4  ;;  %145 = vmatpush.msra.mxu2 %v39_v4  ;;  %v42_v9 = vld [vmem:[%s307_s0 + $0x8] sm:$0xff]  ;;  %s195_s11 = smov [#allocation2]  }
   0x6   :  { %68 = vmatpush.msra.mxu0 %v22_v2  ;;  %v37_v8 = vld [vmem:[%s310_s3 + $0x60] sm:$0xff]  ;;  %v36_v10 = vld [vmem:[%s310_s3 + $0x58] sm:$0xff]  ;;  %v35_v11 = vld [vmem:[%s310_s3 + $0x50] sm:$0xff]  ;;  %s128_s12 = sshll.u32 %s195_s11, 4  ;;  %s130_s15 = sshll.u32 %s312_s5, 4  ;;  %s129_s12 = int_to_ptr.vmem [resolvable:$true] %s128_s12  ;;  %s131_s15 = int_to_ptr.hbm [resolvable:$true] %s130_s15 }
   0x7   :  { %101 = vmatpush.msra.mxu1 %v38_v6  ;;  %146 = vmatpush.msra.mxu2 %v38_v6  ;;  %v34_v12 = vld [vmem:[%s310_s3 + $0x48] sm:$0xff]  ;;  %v33_v13 = vld [vmem:[%s310_s3 + $0x40] sm:$0xff]  ;;  %v32_v14 = vld [vmem:[%s310_s3 + $0x38] sm:$0xff]  ;;  %s196_s16 = smov 128   ;;  %s197_s17 = smov 8  }
   0x8   :  { %69 = vmatpush.msra.mxu0 %v21_v5  ;;  %v31_v15 = vld [vmem:[%s310_s3 + $0x30] sm:$0xff]  ;;  %v30_v16 = vld [vmem:[%s310_s3 + $0x28] sm:$0xff]  ;;  %v29_v17 = vld [vmem:[%s310_s3 + $0x20] sm:$0xff] }
   0x9   :  { %142 = vmatmul.msk.f32.vlgmr.msra.gmra.mxu0 %vm47_vm0, %v41_v7  ;;  %102 = vmatpush.msra.mxu1 %v37_v8  ;;  %v28_v18 = vld [vmem:[%s310_s3 + $0x18] sm:$0xff]  ;;  %v27_v19 = vld [vmem:[%s310_s3 + $0x10] sm:$0xff]  ;;  %v26_v20 = vld [vmem:[%s310_s3 + $0x8] sm:$0xff] }
   0xa   :  { %147 = vmatpush.msra.mxu2 %v37_v8  ;;  %v25_v21 = vld [vmem:[%s310_s3] sm:$0xff] }
   0xb   :  { %103 = vmatpush.msra.mxu1 %v36_v10  ;;  %v163_v22 = vld [vmem:[%s309_s2] ss:$0 sm:$0xff] }
   0xc   :  { %148 = vmatpush.msra.mxu2 %v36_v10  ;;  %v164_v45 = vld [vmem:[%s311_s4] ss:$0 sm:$0xff] }
   0xd   :  { %104 = vmatpush.msra.mxu1 %v35_v11 }
   0xe   :  { %149 = vmatpush.msra.mxu2 %v35_v11 }
   0xf   :  { %105 = vmatpush.msra.mxu1 %v34_v12 }
  0x10   :  { %150 = vmatpush.msra.mxu2 %v34_v12 }
  0x11   :  { %143 = vmatmul.msk.f32.gmra.mxu0 %vm47_vm0, %v42_v9  ;;  %106 = vmatpush.msra.mxu1 %v33_v13 }
  0x12   :  { %151 = vmatpush.msra.mxu2 %v33_v13 }
  0x13   :  { %107 = vmatpush.msra.mxu1 %v32_v14 }
  0x14   :  { %152 = vmatpush.msra.mxu2 %v32_v14 }
  0x15   :  { %108 = vmatpush.msra.mxu1 %v31_v15 }
  0x16   :  { %153 = vmatpush.msra.mxu2 %v31_v15 }
  0x17   :  { %109 = vmatpush.msra.mxu1 %v30_v16 }
  0x18   :  { %154 = vmatpush.msra.mxu2 %v30_v16 }
  0x19   :  { %110 = vmatpush.msra.mxu1 %v29_v17 }
  0x1a   :  { %155 = vmatpush.msra.mxu2 %v29_v17 }
  0x1b   :  { %111 = vmatpush.msra.mxu1 %v28_v18 }
  0x1c   :  { %156 = vmatpush.msra.mxu2 %v28_v18 }
  0x1d   :  { %112 = vmatpush.msra.mxu1 %v27_v19 }
  0x1e   :  { %157 = vmatpush.msra.mxu2 %v27_v19 }
  0x1f   :  { %113 = vmatpush.msra.mxu1 %v26_v20 }
  0x20   :  { %158 = vmatpush.msra.mxu2 %v26_v20 }
  0x21   :  { %114 = vmatpush.msra.mxu1 %v25_v21 }
  0x22   :  { %159 = vmatpush.msra.mxu2 %v25_v21 }
  0x86   :  { %v71_v23 = vpop.f32.mrf.mxu0 }
  0x87   :  { %v72_v24 = vadd.f32 %v163_v22, %v71_v23 }
  0x89   :  { %v79_v25 = vmul.f32 0.044715, %v72_v24  ;;  %v77_v38 = vmul.f32 0.5, %v72_v24 }
  0x8b   :  { %v81_v26 = vmul.f32 %v79_v25, %v72_v24 }
  0x8d   :  { %v83_v27 = vmul.f32 %v81_v26, %v72_v24 }
  0x8e   :  { %v74_v28 = vpop.f32.mrf.mxu0 }
  0x8f   :  { %v75_v29 = vadd.f32 %v163_v22, %v74_v28  ;;  %v85_v30 = vadd.f32 %v83_v27, %v72_v24 }
  0x91   :  { %v87_v31 = vmul.f32 0.7978846, %v85_v30  ;;  %v80_v32 = vmul.f32 0.044715, %v75_v29  ;;  %v78_v42 = vmul.f32 0.5, %v75_v29 }
  0x93   :  { %165 = vtanh.f32 %v87_v31  ;;  %v82_v33 = vmul.f32 %v80_v32, %v75_v29 }
  0x95   :  { %v84_v34 = vmul.f32 %v82_v33, %v75_v29 }
  0x97   :  { %v86_v35 = vadd.f32 %v84_v34, %v75_v29 }
  0x99   :  { %v166_v36 = vpop.eup %165  ;;  %v88_v37 = vmul.f32 0.7978846, %v86_v35 }
  0x9a   :  { %v91_v39 = vadd.f32 1.0, %v166_v36 }
  0x9b   :  { %167 = vtanh.f32 %v88_v37 }
  0x9c   :  { %v93_v40 = vmul.f32 %v91_v39, %v77_v38 }
  0x9e   :  { %115 = vmatmul.f32.vlgmr.msra.gmra.mxu1 %v93_v40 }
  0xa1   :  { %v168_v41 = vpop.eup %167 }
  0xa2   :  { %v92_v43 = vadd.f32 1.0, %v168_v41 }
  0xa4   :  { %v94_v44 = vmul.f32 %v92_v43, %v78_v42 }
  0xa6   :  { %118 = vmatmul.f32.vlgmr.msra.gmra.mxu2 %v94_v44 }
 0x11b   :  { %v116_v46 = vpop.f32.mrf.mxu1 }
 0x11c   :  { %v117_v47 = vadd.f32 %v164_v45, %v116_v46 }
 0x11e   :  { %122 = vst.msk [vmem:[#allocation2] sm:$0xff] %vm47_vm0, %v117_v47 }
 0x129   :  { %v119_v48 = vpop.f32.mrf.mxu2 }
 0x12a   :  { %v120_v49 = vadd.f32 %v164_v45, %v119_v48 }
 0x12c   :  { %123 = vst.msk [vmem:[#allocation2 + $0x8] sm:$0xff] %vm47_vm0, %v120_v49 }
 0x12d   :  { %136 = dma.vmem_to_hbm [thread:$0]  %s129_s12, 256, %s131_s15, [#allocation3], %s196_s16, %s196_s16, %s197_s17  }
 0x12e   :  { %193 = dma.done.wait [#allocation3], 256  }
 0x12f   :  { %194 = vsyncadd [#allocation3], 4294967040 }
 0x130   :  { %141 = vsyncpa [#allocation3], 1 }

</bundles_post_ra>
